<compile_context>
chip_gen: v7x
topology: tpu7x:2x2x1
jax: 0.10.0
libtpu: 0.0.40
codegen_flags: <defaults>
</compile_context>

<pallas_src>
import math

import jax
import jax.numpy as jnp
from jax import lax
from jax.experimental import pallas as pl
from jax.experimental.pallas import tpu as pltpu


def _self_attention_kernel(x_ref, wqkv_ref, o_ref):
    # x_ref:    (bb*S, D)   batch block, flattened at the pallas_call boundary
    # wqkv_ref: (D, 3D)     fused weights; W_q block pre-scaled by 1/sqrt(D)
    # o_ref:    (bb, S*D)   lane-dense output block
    D = wqkv_ref.shape[0]
    bb = o_ref.shape[0]
    S = o_ref.shape[1] // D

    x2 = x_ref[...]                      # native dtype (f32 or bf16) -> MXU operand
    w_qkv = wqkv_ref[...]                # native dtype -> MXU operand

    # Fused Q|K|V projection: one wide MXU matmul (bb*S, D) @ (D, 3D), f32 accum.
    qkv = jnp.dot(x2, w_qkv, preferred_element_type=jnp.float32)   # (bb*S, 3D) f32
    qkv = qkv.reshape(bb, S, 3 * D)
    q = qkv[:, :, 0:D]                   # already scaled by 1/sqrt(D) via W_q block
    k = qkv[:, :, D:2 * D]
    v = qkv[:, :, 2 * D:3 * D]

    # scores = Q @ K^T: contract last dims (batched), no explicit transpose.
    scores = lax.dot_general(
        q, k,
        dimension_numbers=(((2,), (2,)), ((0,), (0,))),
        preferred_element_type=jnp.float32)                        # (bb, S, S) f32

    # Numerically-stable softmax; all statistics in f32, exact reciprocal.
    m = jnp.max(scores, axis=-1, keepdims=True)
    p = jnp.exp(scores - m)
    denom = jnp.sum(p, axis=-1, keepdims=True)
    attn = p / denom                                               # (bb, S, S) f32

    # attn @ V: cast matmul operands back to the input dtype (bf16-native on MXU
    # when inputs are bf16; no-op for f32), accumulate in f32.
    out = lax.dot_general(
        attn.astype(x2.dtype), v.astype(x2.dtype),
        dimension_numbers=(((2,), (1,)), ((0,), (0,))),
        preferred_element_type=jnp.float32)                        # (bb, S, D) f32

    # Lane-dense store: (bb, S*D) is a multiple of 128 lanes -> unmasked vst.
    o_ref[...] = out.reshape(bb, S * D).astype(o_ref.dtype)


def fuse_qkv_weights(w_q, w_k, w_v):
    """Build the fused (D, 3D) weight once (cache/reuse across forward calls).

    The 1/sqrt(D) attention scale is folded into the W_q block.
    """
    D = w_q.shape[0]
    scale = 1.0 / math.sqrt(float(D))
    return jnp.concatenate([w_q * scale, w_k, w_v], axis=1)


def self_attention(x, w_qkv, *, batch_blocks=1):
    """x: (B, S, D); w_qkv: (D, 3D) from fuse_qkv_weights -> (B, S, D).

    batch_blocks=1 (default) collapses the grid — best for small problems and on
    single-TC v5e/v6e.  Only use batch_blocks=2 (sharding across the two v7x
    TensorCores via the "parallel" axis) when per-core x/out traffic is in the
    MiB range or the kernel is MXU-bound; otherwise the duplicated W_qkv DMA and
    ~600-cycle grid-step overhead are a net loss.  If this module is called many
    times per step, stack/vmap the instances so one pallas_call sees a large
    effective batch rather than one call per tiny problem.
    """
    B, S, D = x.shape
    assert w_qkv.shape == (D, 3 * D), "w_qkv must be the fused (D, 3D) weight"
    assert B % batch_blocks == 0, "batch_blocks must divide B"
    bb = B // batch_blocks

    # Boundary-level flatten: free layout plumbing, gives the DMA a clean 2-D
    # lane-contiguous block and avoids an in-kernel relayout copy.
    x2d = x.reshape(B * S, D)

    out2d = pl.pallas_call(
        _self_attention_kernel,
        out_shape=jax.ShapeDtypeStruct((B, S * D), x.dtype),
        grid_spec=pltpu.PrefetchScalarGridSpec(
            num_scalar_prefetch=0,
            grid=(batch_blocks,),
            in_specs=[
                pl.BlockSpec((bb * S, D), lambda i: (i, 0)),   # x batch block (2-D)
                pl.BlockSpec((D, 3 * D), lambda i: (0, 0)),    # fused W_qkv (resident)
            ],
            out_specs=pl.BlockSpec((bb, S * D), lambda i: (i, 0)),  # lane-dense out
        ),
        compiler_params=pltpu.CompilerParams(
            dimension_semantics=("parallel",),   # shards across TCs only if >1 block
        ),
    )(x2d, w_qkv)
    return out2d.reshape(B, S, D)


def xavier_uniform(key, fan_in, fan_out, dtype=jnp.float32):
    bound = math.sqrt(6.0 / (fan_in + fan_out))
    return jax.random.uniform(key, (fan_in, fan_out), dtype=dtype,
                              minval=-bound, maxval=bound)


def reference(x, w_q, w_k, w_v):
    q = jnp.einsum("bsd,de->bse", x, w_q)
    k = jnp.einsum("bsd,de->bse", x, w_k)
    v = jnp.einsum("bsd,de->bse", x, w_v)
    scores = jnp.einsum("bqd,bkd->bqk", q, k) / math.sqrt(x.shape[-1])
    attn = jax.nn.softmax(scores, axis=-1)
    return jnp.einsum("bqk,bkd->bqd", attn, v)


if __name__ == "__main__":
    B, S, D = 2, 8, 32   # batch, seq, input_dim (task_num unused in forward)
    key = jax.random.PRNGKey(0)
    kx, kq, kk, kv = jax.random.split(key, 4)

    x = jax.random.normal(kx, (B, S, D), dtype=jnp.float32)
    w_q = xavier_uniform(kq, D, D)
    w_k = xavier_uniform(kk, D, D)
    w_v = xavier_uniform(kv, D, D)

    # Fused weight built ONCE (outside the per-call wrapper) and reused.
    w_qkv = fuse_qkv_weights(w_q, w_k, w_v)

    out = self_attention(x, w_qkv)       # collapsed grid (default)
    out = jax.block_until_ready(out)

    ref = reference(x, w_q, w_k, w_v)
    assert out.shape == (B, S, D)
    # Exact reciprocal + f32 softmax stats -> tight tolerance restored.
    assert jnp.allclose(out, ref, atol=1e-5, rtol=1e-5), "mismatch vs reference"
    print("KERNEL_OK")
</pallas_src>

<mosaic_0001>
module attributes {stable_mosaic.version = 11 : i64} {
  func.func @_self_attention_kernel(%arg0: i32, %arg1: memref<16x32xf32, #tpu.memory_space<vmem>>, %arg2: memref<32x96xf32, #tpu.memory_space<vmem>>, %arg3: memref<2x256xf32, #tpu.memory_space<vmem>>) attributes {dimension_semantics = [#tpu.dimension_semantics<parallel>], iteration_bounds = array<i64: 1>, scalar_prefetch = 0 : i64, scratch_operands = 0 : i64, tpu.core_type = #tpu.core_type<tc>, window_params = [{transform_indices = @transform_0, window_bounds = array<i64: 16, 32>}, {pipeline_mode = #tpu.pipeline_mode<synchronous>, transform_indices = @transform_1, window_bounds = array<i64: 32, 96>}, {transform_indices = @transform_2, window_bounds = array<i64: 2, 256>}]} {
    %c0 = arith.constant 0 : index
    %c0_0 = arith.constant 0 : index
    %0 = vector.load %arg1[%c0, %c0_0] : memref<16x32xf32, #tpu.memory_space<vmem>>, vector<16x32xf32>
    %c0_1 = arith.constant 0 : index
    %c0_2 = arith.constant 0 : index
    %1 = vector.load %arg2[%c0_1, %c0_2] : memref<32x96xf32, #tpu.memory_space<vmem>>, vector<32x96xf32>
    %cst = arith.constant dense<0.000000e+00> : vector<16x96xf32>
    %2 = tpu.matmul %0, %1, %cst {dimension_numbers = #tpu.dot_dimension_numbers<[1], [0], [0], [1], [0, 0, 1, 1], [], []>} : vector<16x32xf32>, vector<32x96xf32>, vector<16x96xf32> -> vector<16x96xf32>
    %3 = vector.shape_cast %2 : vector<16x96xf32> to vector<2x8x96xf32>
    %4 = vector.extract_strided_slice %3 {offsets = [0, 0, 0], sizes = [2, 8, 32], strides = [1, 1, 1]} : vector<2x8x96xf32> to vector<2x8x32xf32>
    %5 = vector.extract_strided_slice %3 {offsets = [0, 0, 32], sizes = [2, 8, 32], strides = [1, 1, 1]} : vector<2x8x96xf32> to vector<2x8x32xf32>
    %6 = vector.extract_strided_slice %3 {offsets = [0, 0, 64], sizes = [2, 8, 32], strides = [1, 1, 1]} : vector<2x8x96xf32> to vector<2x8x32xf32>
    %cst_3 = arith.constant dense<0.000000e+00> : vector<2x8x8xf32>
    %7 = tpu.matmul %4, %5, %cst_3 {dimension_numbers = #tpu.dot_dimension_numbers<[2], [2], [1], [1], [0, 0, 0, 1, 1, 1], [0], [0]>} : vector<2x8x32xf32>, vector<2x8x32xf32>, vector<2x8x8xf32> -> vector<2x8x8xf32>
    %cst_4 = arith.constant dense<0xFF800000> : vector<2x8xf32>
    %8 = vector.multi_reduction <maximumf>, %7, %cst_4 [2] : vector<2x8x8xf32> to vector<2x8xf32>
    %9 = vector.shape_cast %8 : vector<2x8xf32> to vector<2x8x1xf32>
    %10 = vector.broadcast %9 : vector<2x8x1xf32> to vector<2x8x8xf32>
    %11 = arith.subf %7, %10 : vector<2x8x8xf32>
    %12 = math.exp %11 : vector<2x8x8xf32>
    %cst_5 = arith.constant dense<0.000000e+00> : vector<2x8xf32>
    %13 = vector.multi_reduction <add>, %12, %cst_5 [2] : vector<2x8x8xf32> to vector<2x8xf32>
    %14 = vector.shape_cast %13 : vector<2x8xf32> to vector<2x8x1xf32>
    %15 = vector.broadcast %14 : vector<2x8x1xf32> to vector<2x8x8xf32>
    %16 = arith.divf %12, %15 : vector<2x8x8xf32>
    %cst_6 = arith.constant dense<0.000000e+00> : vector<2x8x32xf32>
    %17 = tpu.matmul %16, %6, %cst_6 {dimension_numbers = #tpu.dot_dimension_numbers<[2], [1], [1], [2], [0, 0, 0, 1, 1, 2], [0], [0]>} : vector<2x8x8xf32>, vector<2x8x32xf32>, vector<2x8x32xf32> -> vector<2x8x32xf32>
    %18 = vector.shape_cast %17 : vector<2x8x32xf32> to vector<2x256xf32>
    %c0_7 = arith.constant 0 : index
    %c0_8 = arith.constant 0 : index
    %19 = vector.load %arg3[%c0_7, %c0_8] : memref<2x256xf32, #tpu.memory_space<vmem>>, vector<2x256xf32>
    tpu.vector_store %arg3[%c0_7, %c0_8], %18 {strides = array<i32>} : memref<2x256xf32, #tpu.memory_space<vmem>>, vector<2x256xf32>,
    return
  }
  func.func @transform_0(%arg0: i32) -> (i32, i32) {
    %c0_i32 = arith.constant 0 : i32
    %c0_i32_0 = arith.constant 0 : i32
    return %arg0, %c0_i32 : i32, i32
  }
  func.func @transform_1(%arg0: i32) -> (i32, i32) {
    %c0_i32 = arith.constant 0 : i32
    %c0_i32_0 = arith.constant 0 : i32
    %c0_i32_1 = arith.constant 0 : i32
    return %c0_i32, %c0_i32_0 : i32, i32
  }
  func.func @transform_2(%arg0: i32) -> (i32, i32) {
    %c0_i32 = arith.constant 0 : i32
    %c0_i32_0 = arith.constant 0 : i32
    return %arg0, %c0_i32 : i32, i32
  }
}

</mosaic_0001>

<bundles_post_ra>
// kernel: tpu_custom_call.1
= control target key start
LH: loop header
LB: loop body
LE: loop exit
PB: predicated region body
PF: predicated region fallthrough
CT: control target
= control target key end

     0   :  { %7 = vsyncpa [#allocation3], 0  ;;  %s840_s0 = inlined_call_operand.hbm [shape: f32[16,32], index: 0, kind: input, shape index: {}]   ;;  %s841_s1 = inlined_call_operand.hbm [shape: f32[32,96], index: 1, kind: input, shape index: {}]   ;;  %s842_s2 = inlined_call_operand.hbm [shape: f32[2,256], index: 2, kind: output, shape index: {}]  }
   0x1   :  { %8 = vsyncpa [#allocation6], 0 }
   0x2   :  { %9 = vsyncpa [#allocation4], 0  ;;  %s737_s9 = smov [#allocation2]   ;;  %s665_s13 = scalar_lea.hbm %s840_s0, 256 }
   0x3   :  { %s15_s10 = sshll.u32 %s737_s9, 4  ;;  %p666_p0 = scmp.ne.s32.totalorder %s840_s0, %s665_s13  ;;  %s16_s10 = int_to_ptr.vmem [resolvable:$true] %s15_s10 }
   0x4   :  { %p669_p1 = scmp.lt.u32.totalorder %s665_s13, %s840_s0 }
   0x6   :  { %p671_p2 = pnand %p669_p1, %p666_p0 }
   0x8   :  { %674 = shalt.err (!%p671_p2)
}
   0x9   :  { %s675_s18 = scalar_lea.vmem %s16_s10, 256  ;;  %p680_p4 = scmp.lt.s32.totalorder %s16_s10, %s16_s10 }
   0xa   :  { %p676_p3 = scmp.ne.s32.totalorder %s16_s10, %s675_s18  ;;  %p681_p5 = scmp.lt.s32.totalorder %s675_s18, %s675_s18 }
   0xc   :  { %p682_p6 = por %p681_p5, %p680_p4 }
   0xe   :  { %p683_p7 = pnand %p682_p6, %p676_p3 }
  0x10   :  { %686 = shalt.err (!%p683_p7)
}
  0x11   :  { %s738_s19 = smov 128   ;;  %s739_s20 = smov 8  }
  0x12   :  { %21 = dma.hbm_to_vmem [thread:$0]  %s840_s0, 256, %s16_s10, [#allocation3], %s738_s19, %s738_s19, %s739_s20  }
  0x13   :  { %s740_s23 = smov [#allocation5]   ;;  %s687_s27 = scalar_lea.hbm %s841_s1, 512 }
  0x14   :  { %s27_s24 = sshll.u32 %s740_s23, 4  ;;  %p688_p8 = scmp.ne.s32.totalorder %s841_s1, %s687_s27  ;;  %s28_s24 = int_to_ptr.vmem [resolvable:$true] %s27_s24 }
  0x15   :  { %p691_p9 = scmp.lt.u32.totalorder %s687_s27, %s841_s1 }
  0x17   :  { %p693_p10 = pnand %p691_p9, %p688_p8 }
  0x19   :  { %696 = shalt.err (!%p693_p10)
}
  0x1a   :  { %s697_s4 = scalar_lea.vmem %s28_s24, 512  ;;  %p702_p12 = scmp.lt.s32.totalorder %s28_s24, %s28_s24 }
  0x1b   :  { %p698_p11 = scmp.ne.s32.totalorder %s28_s24, %s697_s4  ;;  %p703_p13 = scmp.lt.s32.totalorder %s697_s4, %s697_s4 }
  0x1d   :  { %p704_p0 = por %p703_p13, %p702_p12 }
  0x1f   :  { %p705_p1 = pnand %p704_p0, %p698_p11 }
  0x21   :  { %708 = shalt.err (!%p705_p1)
}
  0x22   :  { %33 = dma.hbm_to_vmem [thread:$0]  %s841_s1, 512, %s28_s24, [#allocation6], %s738_s19, %s738_s19, %s739_s20  }
  0x23   :  { %731 = dma.done.wait [#allocation3], 256  }
  0x24   :  { %732 = vsyncadd [#allocation3], 4294967040 }
  0x25   :  { %733 = dma.done.wait [#allocation6], 512  }
  0x26   :  { %734 = vsyncadd [#allocation6], 4294966784  ;;  %vm46_vm0 = vcmask 261120   ;;  %v42_v0 = vld [vmem:[#allocation5] sm:$0xff]  ;;  %v43_v1 = vld [vmem:[#allocation5 + $0x8] sm:$0xff]  ;;  %v741_v8 = vmov 0.0   ;;  %v461_v39 = vlaneseq }
  0x27   :  { %v44_v2 = vld [vmem:[#allocation5 + $0x10] sm:$0xff]  ;;  %v637_v3 = vpack.c.bf16 %v43_v1, %v42_v0  ;;  %v45_v4 = vld [vmem:[#allocation5 + $0x18] sm:$0xff]  ;;  %617 = vmatprep.subr.mxu1 %v741_v8  ;;  %vm742_vm1 = vmmov 0   ;;  %s743_s1 = smov 96   ;;  %vm282_vm2 = vcmask 64512   ;;  %s744_s6 = smov 64  }
  0x28   :  { %v40_v5 = vld [vmem:[#allocation2] sm:$0xff]  ;;  %v641_v6 = vpack.c.bf16 %v45_v4, %v44_v2  ;;  %v41_v7 = vld [vmem:[#allocation2 + $0x8] sm:$0xff]  ;;  %619 = vmatprep.mubr.msk.f32.mxu1 %vm742_vm1, %v741_v8  ;;  %v745_v37 = vmov 1983009808   ;;  %v462_v41 = vshrl.u32 %v461_v39, 7  ;;  %s747_s7 = smov 32  }
  0x29   :  { %614 = vmatprep.mubr.msk.f32.mxu0 %vm46_vm0, %v40_v5  ;;  %638 = vmatprep.subr.bf16.mxu0 %v637_v3  ;;  %v459_v38 = vunpack.c.l.s4 %v745_v37  ;;  %v746_v42 = vmov 1934713408   ;;  %vm548_vm3 = vcmask 523264   ;;  %vm550_vm4 = vcmask 785408   ;;  %s748_s8 = smov [#allocation7]  }
  0x2a   :  { %640 = vmatpush3.bf16.msra.mxu0 %v637_v3  ;;  %v490_v43 = vunpack.c.l.s4 %v746_v42  ;;  %s573_s9 = sshll.u32 %s748_s8, 4  ;;  %s574_s9 = int_to_ptr.vmem [resolvable:$true] %s573_s9 }
  0x2b   :  { %642 = vmatprep.subr.bf16.mxu0 %v641_v6  ;;  %v460_v40 = vunpack.c.0.s8 %v459_v38  ;;  %s709_s10 = scalar_lea.vmem %s574_s9, 64  ;;  %p714_p3 = scmp.lt.s32.totalorder %s574_s9, %s574_s9 }
  0x2c   :  { %v491_v47 = vunpack.c.0.s8 %v490_v43  ;;  %p710_p2 = scmp.ne.s32.totalorder %s574_s9, %s709_s10  ;;  %p715_p4 = scmp.lt.s32.totalorder %s709_s10, %s709_s10 }
  0x2d   :  { %v463_v45 = vsub.s32 %v460_v40, %v462_v41 }
  0x2e   :  { %644 = vmatpush3.bf16.msra.mxu0 %v641_v6  ;;  %v494_v53 = vsub.s32 %v491_v47, %v462_v41  ;;  %p716_p5 = por %p715_p4, %p714_p3 }
  0x2f   :  { %627 = vmatprep.subr.mxu0 %v741_v8 }
  0x30   :  { %p717_p6 = pnand %p716_p5, %p710_p2 }
  0x31   :  { %615 = vmatmul.mubr.msk.f32.vlgmr.msra.gmra.mrb[0].mxu0 %vm46_vm0, %v41_v7 }
  0x32   :  { %629 = vmatprep.mubr.msk.f32.mxu0 %vm742_vm1, %v741_v8 }
 0x104   :  { %v616_v9 = vpop.f32.mrb[0].mxu0 }
 0x105   :  { %v119_v10 = vpop.f32.mrb[1].mxu0 }
 0x106   :  { %129 = vrot.lane.b32.xlu0 %v119_v10, %s743_s1 }
 0x10a   :  { %206 = vrot.lane.b32.xlu0 %v616_v9, %s743_s1 }
 0x178   :  { %v130_v11 = vpop.permute.xlu0 %129 }
 0x179   :  { %618 = vmatpush3.xpose.msk.msra.mxu1 %vm46_vm0, %v130_v11 }
 0x17a   :  { %622 = vmatprep.subr.mxu1 %v741_v8 }
 0x17c   :  { %620 = vmatmul.mubr.msk.f32.vlgmr.msra.gmra.mrb[0].mxu1 %vm46_vm0, %v119_v10  ;;  %v207_v12 = vpop.permute.xlu0 %206 }
 0x17d   :  { %623 = vmatpush3.xpose.msk.msra.mxu1 %vm46_vm0, %v207_v12  ;;  %624 = vmatprep.mubr.msk.f32.mxu1 %vm742_vm1, %v741_v8 }
 0x17e   :  { %632 = vmatprep.subr.mxu1 %v741_v8 }
 0x180   :  { %625 = vmatmul.mubr.msk.f32.vlgmr.msra.gmra.mrb[2].mxu1 %vm46_vm0, %v616_v9 }
 0x181   :  { %634 = vmatprep.mubr.msk.f32.mxu1 %vm742_vm1, %v741_v8 }
 0x24f   :  { %v201_v13 = vpop.f32.mrb[0].mxu1 }
 0x250   :  { %v621_v14 = vpop.f32.mrb[1].mxu1  ;;  %v283_v15 = vsel %vm282_vm2, %v201_v13, -inf }
 0x251   :  { %284 = vmax.xlane.f32.xlu1 %v283_v15 }
 0x253   :  { %v278_v16 = vpop.f32.mrb[2].mxu1 }
 0x254   :  { %v626_v17 = vpop.f32.mrb[3].mxu1  ;;  %v286_v18 = vsel %vm282_vm2, %v278_v16, -inf }
 0x255   :  { %287 = vmax.xlane.f32.xlu1 %v286_v18 }
 0x266   :  { %305 = vrot.lane.b32.xlu1 %v119_v10, %s744_s6 }
 0x2de   :  { %v285_v19 = vpop.xlane.xlu1 %284 }
 0x2df   :  { %v289_v20 = vsub.f32 %v201_v13, %v285_v19 }
 0x2e1   :  { %v291_v21 = vmul.f32 1.442695, %v289_v20 }
 0x2e2   :  { %v288_v22 = vpop.xlane.xlu1 %287 }
 0x2e3   :  { %657 = vpow2.f32 %v291_v21  ;;  %v290_v23 = vsub.f32 %v278_v16, %v288_v22 }
 0x2e5   :  { %v293_v24 = vmul.f32 1.442695, %v290_v23 }
 0x2e6   :  { %v306_v25 = vpop.permute.xlu1 %305 }
 0x2e7   :  { %659 = vpow2.f32 %v293_v24  ;;  %628 = vmatpush3.msra.mxu0 %v306_v25 }
 0x2ed   :  { %v658_v26 = vpop.eup %657 }
 0x2ee   :  { %v295_v27 = vsel %vm282_vm2, %v658_v26, 0.0 }
 0x2ef   :  { %296 = vadd.xlane.f32.xlu0 %v295_v27 }
 0x2f1   :  { %v660_v28 = vpop.eup %659 }
 0x2f2   :  { %v298_v29 = vsel %vm282_vm2, %v660_v28, 0.0 }
 0x2f3   :  { %299 = vadd.xlane.f32.xlu1 %v298_v29 }
 0x304   :  { %381 = vrot.lane.b32.xlu1 %v616_v9, %s744_s6 }
 0x37c   :  { %v297_v30 = vpop.xlane.xlu0 %296 }
 0x37d   :  { %661 = vrcp.f32 %v297_v30 }
 0x380   :  { %v300_v31 = vpop.xlane.xlu1 %299 }
 0x381   :  { %663 = vrcp.f32 %v300_v31 }
 0x384   :  { %v382_v32 = vpop.permute.xlu1 %381 }
 0x385   :  { %633 = vmatpush3.msra.mxu1 %v382_v32 }
 0x387   :  { %v662_v33 = vpop.eup %661 }
 0x388   :  { %v302_v34 = vmul.f32 %v662_v33, %v658_v26 }
 0x38a   :  { %630 = vmatmul.mubr.msk.f32.vlgmr.msra.gmra.mrb[2].mxu0 %vm282_vm2, %v302_v34 }
 0x38b   :  { %v664_v35 = vpop.eup %663 }
 0x38c   :  { %v304_v36 = vmul.f32 %v664_v35, %v660_v28 }
 0x38e   :  { %635 = vmatmul.mubr.msk.f32.vlgmr.msra.gmra.mrb[4].mxu1 %vm282_vm2, %v304_v36 }
 0x45d   :  { %v377_v44 = vpop.f32.mrb[2].mxu0 }
 0x45e   :  { %v631_v46 = vpop.f32.mrb[3].mxu0  ;;  %v457_v48 = vcombine.high %v377_v44, %v741_v8  ;;  %v464_v50 = vrot.slane %v377_v44, %v463_v45 }
 0x460   :  { %v471_v55 = vrot.slane %v457_v48, %v463_v45 }
 0x461   :  { %v453_v49 = vpop.f32.mrb[4].mxu1 }
 0x462   :  { %v472_v51 = vcombine.high %v453_v49, %v741_v8  ;;  %v479_v52 = vrot.slane %v453_v49, %v463_v45  ;;  %v636_v54 = vpop.f32.mrb[5].mxu1 }
 0x464   :  { %v486_v56 = vrot.slane %v472_v51, %v463_v45  ;;  %v487_v57 = vcombine.low %v464_v50, %v479_v52  ;;  %v488_v58 = vcombine.high %v464_v50, %v479_v52 }
 0x466   :  { %v495_v59 = vrot.slane %v487_v57, %v494_v53  ;;  %v503_v60 = vcombine.low %v471_v55, %v486_v56  ;;  %v504_v61 = vcombine.high %v471_v55, %v486_v56  ;;  %v502_v62 = vrot.slane %v488_v58, %v494_v53 }
 0x468   :  { %528 = vrot.lane.b32.xlu0 %v502_v62, %s744_s6  ;;  %v519_v63 = vcombine.high %v495_v59, %v741_v8  ;;  %v518_v0 = vrot.slane %v504_v61, %v494_v53  ;;  %v520_v1 = vcombine.high %v502_v62, %v741_v8  ;;  %v511_v2 = vrot.slane %v503_v60, %v494_v53 }
 0x46a   :  { %524 = vrot.lane.b32.xlu1 %v519_v63, %s747_s7  ;;  %v521_v3 = vcombine.high %v511_v2, %v741_v8  ;;  %v522_v4 = vcombine.high %v518_v0, %v741_v8 }
 0x46e   :  { %540 = vrot.lane.b32.xlu1 %v518_v0, %s744_s6 }
 0x472   :  { %532 = vrot.lane.b32.xlu1 %v520_v1, %s743_s1 }
 0x476   :  { %536 = vrot.lane.b32.xlu1 %v521_v3, %s747_s7 }
 0x47a   :  { %544 = vrot.lane.b32.xlu1 %v522_v4, %s743_s1 }
 0x4da   :  { %v529_v12 = vpop.permute.xlu0 %528 }
 0x4dc   :  { %v525_v5 = vpop.permute.xlu1 %524 }
 0x4dd   :  { %v547_v10 = vsel %vm46_vm0, %v495_v59, %v525_v5 }
 0x4de   :  { %v549_v13 = vsel %vm548_vm3, %v547_v10, %v529_v12 }
 0x4e0   :  { %v541_v6 = vpop.permute.xlu1 %540 }
 0x4e4   :  { %v533_v7 = vpop.permute.xlu1 %532 }
 0x4e5   :  { %v551_v16 = vsel %vm550_vm4, %v549_v13, %v533_v7 }
 0x4e8   :  { %v537_v9 = vpop.permute.xlu1 %536 }
 0x4e9   :  { %v552_v11 = vsel %vm46_vm0, %v511_v2, %v537_v9 }
 0x4ea   :  { %v553_v14 = vsel %vm548_vm3, %v552_v11, %v541_v6 }
 0x4ec   :  { %v545_v15 = vpop.permute.xlu1 %544 }
 0x4ed   :  { %v554_v8 = vsel %vm550_vm4, %v553_v14, %v545_v15 }
 0x4ee   :  { %v557_v17 = vcombine.low %v551_v16, %v554_v8 }
 0x4f0   :  { %591 = vst.sshfl [vmem:[#allocation7] sm:$0x33 pattern:$0x76325410] %v557_v17 }
 0x4f1   :  { %720 = shalt.err (!%p717_p6)
}
 0x4f2   :  { %s721_s13 = scalar_lea.hbm %s842_s2, 64 }
 0x4f3   :  { %p722_p7 = scmp.ne.s32.totalorder %s842_s2, %s721_s13  ;;  %p725_p8 = scmp.lt.u32.totalorder %s721_s13, %s842_s2 }
 0x4f5   :  { %p727_p9 = pnand %p725_p8, %p722_p7 }
 0x4f7   :  { %730 = shalt.err (!%p727_p9)
}
 0x4f8   :  { %576 = dma.vmem_to_hbm [thread:$0]  %s574_s9, 64, %s842_s2, [#allocation4]  }
 0x4f9   :  { %735 = dma.done.wait [#allocation4], 64  }
 0x4fa   :  { %736 = vsyncadd [#allocation4], 4294967232 }
 0x4fb   :  { %580 = vsyncpa [#allocation3], 1 }
 0x4fc   :  { %581 = vsyncpa [#allocation6], 1 }
 0x4fd   :  { %582 = vsyncpa [#allocation4], 1 }

</bundles_post_ra>
